<compile_context>
chip_gen: v7x
topology: tpu7x:2x2x1
jax: 0.10.0
libtpu: 0.0.40
codegen_flags: <defaults>
</compile_context>

<pallas_src>
import functools

import jax
import jax.numpy as jnp
import numpy as np
from jax.experimental import pallas as pl
from jax.experimental.pallas import tpu as pltpu


def _round_up(a, b):
    return ((a + b - 1) // b) * b


def _make_kernel(C_in, C_out, stride, W, off1, offs, cdtype):
    """Kernel body.  All operands are lane-dense; taps are static slices."""

    def tap_start(q):
        # slab layout: flat col = (phase)*W + b*Lp + m  <->  padded col stride*m + phase
        return (q % stride) * W + (q // stride)

    skip_starts = [tap_start(offs + k) for k in range(3)]
    conv1_starts = [tap_start(off1 + k) for k in range(3)]
    conv2_starts = [0, 1, 2]

    def conv3(w_ref, operand, starts, width):
        acc = None
        for k, s0 in enumerate(starts):
            t = jnp.dot(w_ref[k], operand[:, s0:s0 + width],
                        preferred_element_type=jnp.float32)
            acc = t if acc is None else acc + t
        return acc

    def kernel(xs_ref, w1_ref, w2_ref, ws_ref, pin_ref, pout_ref,
               hm_ref, vm_ref, o_ref):
        xs = xs_ref[0]                                        # (C_in, TW) f32

        # BN1 -> ReLU, with the zero-padding halos restored by the mask
        # (halo columns of relu(BN1(0)) are not zero in general).
        a1 = jnp.maximum(xs * pin_ref[0] + pin_ref[1], 0.0) * hm_ref[...]
        a1c = a1.astype(cdtype)
        xsc = xs.astype(cdtype)

        # ---- conv_skip: Conv1d(k=3, stride, pad=1) with skip-BN folded in ---
        # (scs folded into ws rows; conv bias folded into shsf = pout[2])
        skip = conv3(ws_ref, xsc, skip_starts, W) + pout_ref[2]

        # ---- conv_block: Conv1d(k=3, stride, padding) -> BN2 -> ReLU --------
        # (sc2 folded into w1 rows; conv1 bias folded into sh2f = pout[0])
        # Produced at width W+2 and shifted one lane right, so conv2's
        # neighbours are contiguous slices; invalid lanes zeroed by vm mask.
        acc1 = conv3(w1_ref, a1c, conv1_starts, W + 2)
        a2 = (jnp.maximum(acc1 + pout_ref[0], 0.0) * vm_ref[...]).astype(cdtype)

        # ---- Conv1d(k=3, stride=1, pad=1) ------------------------------------
        block = conv3(w2_ref, a2, conv2_starts, W) + pout_ref[1]

        o_ref[0] = (block + skip).astype(o_ref.dtype)

    return kernel


def residual_conv_forward(x, p, stride, padding, *,
                          compute_dtype=jnp.float32, batch_block=None):
    N, C_in, L = x.shape
    C_out = p["w1"].shape[0]
    s = int(stride)
    pad = int(padding)

    L_out = (L + 2 * pad - 3) // s + 1
    L_out_skip = (L + 2 * 1 - 3) // s + 1
    assert L_out == L_out_skip and L_out >= 1, \
        "block/skip output lengths must match (as in the PyTorch module)"

    # ------------------------ fold BN / biases (f32) ------------------------
    eps = 1e-5

    def fold_bn(g, b, m, v):
        sc = g / jnp.sqrt(v + eps)
        return sc, b - m * sc

    sc1, sh1 = fold_bn(p["bn1_g"], p["bn1_b"], p["bn1_m"], p["bn1_v"])
    sc2, sh2 = fold_bn(p["bn2_g"], p["bn2_b"], p["bn2_m"], p["bn2_v"])
    scs, shs = fold_bn(p["bns_g"], p["bns_b"], p["bns_m"], p["bns_v"])
    sh2f = p["b1"] * sc2 + sh2          # conv1 bias -> BN2 shift
    shsf = p["bs"] * scs + shs          # skip bias  -> skip-BN shift

    # BN scales folded into the conv weights (f32 BEFORE any bf16 cast),
    # then packed tap-major: w[k] = (C_out, C).
    w1f = p["w1"] * sc2[:, None, None]
    wsf = p["ws"] * scs[:, None, None]
    w1k = jnp.transpose(w1f, (2, 0, 1)).astype(compute_dtype)
    wsk = jnp.transpose(wsf, (2, 0, 1)).astype(compute_dtype)
    w2k = jnp.transpose(p["w2"], (2, 0, 1)).astype(compute_dtype)

    pin = jnp.stack([sc1, sh1]).reshape(2, C_in, 1).astype(jnp.float32)
    pout = jnp.stack([sh2f, p["b2"], shsf]).reshape(3, C_out, 1).astype(jnp.float32)

    # ------------------------ layout constants ------------------------------
    H = max(pad, 1) + s                 # left halo of the padded input window
    off1 = H - pad - s                  # conv1 produces output j at lane j+1
    offs = H - 1                        # skip  produces output j at lane j
    d1_max = (off1 + 2) // s
    ds_max = (offs + 2) // s
    extra = max(2, 1 + d1_max, ds_max)  # per-batch lane padding of the output
    tail_min = max(d1_max + 2, ds_max)  # zero tail so all tap slices stay in-bounds

    # ------------------------ pick B (batch items per grid step) ------------
    def est_bytes(Bc):
        Lp_c = L_out + extra
        if Bc & (Bc - 1) == 0:
            Lp_c = _round_up(Lp_c, max(1, 128 // Bc))
        W_c = Bc * Lp_c
        TW_c = _round_up(s * W_c + tail_min, 128)
        live = 4 * (3 * C_in * TW_c + 8 * C_out * (W_c + 2))
        io = 2 * 4 * (C_in * TW_c + C_out * W_c)
        return live + io

    if batch_block is None:
        B = max(1, min(N, 256 // max(1, L_out)))
        B = 1 << (B.bit_length() - 1)                # power of two
        while B > 1 and pl.cdiv(N, B) < 2:           # keep >=2 blocks (v7x TCs)
            B //= 2
    else:
        B = max(1, min(N, int(batch_block)))
    while B > 1 and est_bytes(B) > (20 << 20):       # VMEM budget cap
        B //= 2

    nb = pl.cdiv(N, B)
    Np = nb * B

    Lp = L_out + extra
    if B & (B - 1) == 0:                 # make W an exact multiple of 128 lanes
        Lp = _round_up(Lp, max(1, 128 // B))
    W = B * Lp                           # lane width of the output slab
    Lpad = s * Lp                        # per-batch padded input length
    TW = _round_up(s * W + tail_min, 128)  # lane width of the input slab

    # ------------------------ host-side input slab --------------------------
    # Pre-pad, phase-deinterleave (stride) and flatten batch onto the lane
    # axis so the kernel sees one lane-dense slab per grid step:
    #   slab[n, c, (phase*B + b)*Lp + m] = x_pad[n*B + b, c, stride*m + phase]
    xb = jnp.pad(x, ((0, Np - N), (0, 0), (0, 0)))
    xp = jnp.pad(xb, ((0, 0), (0, 0), (H, max(0, Lpad - H - L))))[:, :, :Lpad]
    xq = xp.reshape(Np, C_in, Lp, s).transpose(0, 1, 3, 2)       # (Np,C_in,s,Lp)
    xq = xq.reshape(nb, B, C_in, s, Lp).transpose(0, 2, 3, 1, 4)  # (nb,C_in,s,B,Lp)
    slab = xq.reshape(nb, C_in, s * W)
    slab = jnp.pad(slab, ((0, 0), (0, 0), (0, TW - s * W))).astype(jnp.float32)

    # Halo mask: 1 on real data columns of the slab, 0 on padding / tail.
    m_idx = jnp.arange(Lp)
    r_idx = jnp.arange(s)
    padded_col = s * m_idx[None, :] + r_idx[:, None]              # (s, Lp)
    hm2 = ((padded_col >= H) & (padded_col < H + L)).astype(jnp.float32)
    hm = jnp.broadcast_to(hm2[:, None, :], (s, B, Lp)).reshape(1, s * W)
    hm = jnp.pad(hm, ((0, 0), (0, TW - s * W)))

    # Valid-lane mask for a2 (conv1 output lives at lanes 1..L_out per batch;
    # lane 0 / lanes > L_out act as conv2's zero padding).
    pcol = jnp.arange(Lp)
    vrow = ((pcol >= 1) & (pcol <= L_out)).astype(jnp.float32)
    vm = jnp.pad(jnp.tile(vrow, B), (0, 2)).reshape(1, W + 2)

    # ------------------------ pallas_call ------------------------------------
    kernel = _make_kernel(C_in, C_out, s, W, off1, offs, compute_dtype)

    def rep(a):
        nd = a.ndim
        return pl.BlockSpec(a.shape, lambda n, nd=nd: (0,) * nd)

    grid_spec = pltpu.PrefetchScalarGridSpec(
        num_scalar_prefetch=0,
        grid=(nb,),
        in_specs=[
            pl.BlockSpec((1, C_in, TW), lambda n: (n, 0, 0)),
            rep(w1k), rep(w2k), rep(wsk), rep(pin), rep(pout), rep(hm), rep(vm),
        ],
        out_specs=pl.BlockSpec((1, C_out, W), lambda n: (n, 0, 0)),
    )

    const_bytes = sum(int(np.prod(a.shape)) * a.dtype.itemsize
                      for a in (w1k, w2k, wsk, pin, pout, hm, vm))
    need = (2 * 4 * (C_in * TW + C_out * W)          # double-buffered in/out blocks
            + 4 * (3 * C_in * TW + 8 * C_out * (W + 2))  # live f32 values
            + const_bytes + (4 << 20))
    vmem_limit = int(min(max(need, 32 << 20), 64 << 20))

    y = pl.pallas_call(
        kernel,
        out_shape=jax.ShapeDtypeStruct((nb, C_out, W), jnp.float32),
        grid_spec=grid_spec,
        compiler_params=pltpu.CompilerParams(
            dimension_semantics=("parallel",),      # shard batch blocks across TCs
            vmem_limit_bytes=vmem_limit),
    )(slab, w1k, w2k, wsk, pin, pout, hm, vm)

    # Lane-dense (nb, C_out, B*Lp) slab -> (N, C_out, L_out)  (host-side plumbing).
    y = y.reshape(nb, C_out, B, Lp).transpose(0, 2, 1, 3).reshape(Np, C_out, Lp)
    return y[:N, :, :L_out]


def reference_forward(x, p, stride, padding):
    """Pure-JAX reference mirroring the PyTorch module (eval-mode BN)."""
    eps = 1e-5

    def bn(y, g, b, m, v):
        sc = (g / jnp.sqrt(v + eps))[None, :, None]
        return (y - m[None, :, None]) * sc + b[None, :, None]

    def conv1d(y, w, b, s, pad):
        out = jax.lax.conv_general_dilated(
            y, w, window_strides=(s,), padding=[(pad, pad)],
            dimension_numbers=("NCH", "OIH", "NCH"))
        return out + b[None, :, None]

    a = jax.nn.relu(bn(x, p["bn1_g"], p["bn1_b"], p["bn1_m"], p["bn1_v"]))
    h = conv1d(a, p["w1"], p["b1"], stride, padding)
    a2 = jax.nn.relu(bn(h, p["bn2_g"], p["bn2_b"], p["bn2_m"], p["bn2_v"]))
    block = conv1d(a2, p["w2"], p["b2"], 1, 1)
    s_ = conv1d(x, p["ws"], p["bs"], stride, 1)
    skip = bn(s_, p["bns_g"], p["bns_b"], p["bns_m"], p["bns_v"])
    return block + skip


if __name__ == "__main__":
    key = jax.random.PRNGKey(0)
    N, C_in, C_out, L = 2, 4, 8, 16
    stride, padding = 2, 1

    ks = jax.random.split(key, 20)
    x = jax.random.normal(ks[0], (N, C_in, L), jnp.float32)

    params = dict(
        w1=0.2 * jax.random.normal(ks[1], (C_out, C_in, 3), jnp.float32),
        b1=0.1 * jax.random.normal(ks[2], (C_out,), jnp.float32),
        w2=0.2 * jax.random.normal(ks[3], (C_out, C_out, 3), jnp.float32),
        b2=0.1 * jax.random.normal(ks[4], (C_out,), jnp.float32),
        ws=0.2 * jax.random.normal(ks[5], (C_out, C_in, 3), jnp.float32),
        bs=0.1 * jax.random.normal(ks[6], (C_out,), jnp.float32),
        bn1_g=1.0 + 0.1 * jax.random.normal(ks[7], (C_in,), jnp.float32),
        bn1_b=0.1 * jax.random.normal(ks[8], (C_in,), jnp.float32),
        bn1_m=0.1 * jax.random.normal(ks[9], (C_in,), jnp.float32),
        bn1_v=1.0 + 0.1 * jax.random.uniform(ks[10], (C_in,), jnp.float32),
        bn2_g=1.0 + 0.1 * jax.random.normal(ks[11], (C_out,), jnp.float32),
        bn2_b=0.1 * jax.random.normal(ks[12], (C_out,), jnp.float32),
        bn2_m=0.1 * jax.random.normal(ks[13], (C_out,), jnp.float32),
        bn2_v=1.0 + 0.1 * jax.random.uniform(ks[14], (C_out,), jnp.float32),
        bns_g=1.0 + 0.1 * jax.random.normal(ks[15], (C_out,), jnp.float32),
        bns_b=0.1 * jax.random.normal(ks[16], (C_out,), jnp.float32),
        bns_m=0.1 * jax.random.normal(ks[17], (C_out,), jnp.float32),
        bns_v=1.0 + 0.1 * jax.random.uniform(ks[18], (C_out,), jnp.float32),
    )

    ref = reference_forward(x, params, stride, padding)

    # f32 matmul operands: tight check.
    out_f32 = residual_conv_forward(x, params, stride, padding,
                                    compute_dtype=jnp.float32)
    out_f32 = jax.block_until_ready(out_f32)
    np.testing.assert_allclose(np.asarray(out_f32), np.asarray(ref),
                               rtol=1e-4, atol=1e-4)

    # bf16 matmul operands with f32 accumulation (v6e/v7x fast path).
    out_bf16 = residual_conv_forward(x, params, stride, padding,
                                     compute_dtype=jnp.bfloat16)
    out_bf16 = jax.block_until_ready(out_bf16)
    np.testing.assert_allclose(np.asarray(out_bf16), np.asarray(ref),
                               rtol=1e-1, atol=1e-1)

    print("KERNEL_OK")
</pallas_src>

<mosaic_0001>
module attributes {stable_mosaic.version = 11 : i64} {
  func.func @kernel(%arg0: i32, %arg1: memref<1x4x384xf32, #tpu.memory_space<vmem>>, %arg2: memref<3x8x4xf32, #tpu.memory_space<vmem>>, %arg3: memref<3x8x8xf32, #tpu.memory_space<vmem>>, %arg4: memref<3x8x4xf32, #tpu.memory_space<vmem>>, %arg5: memref<2x4x1xf32, #tpu.memory_space<vmem>>, %arg6: memref<3x8x1xf32, #tpu.memory_space<vmem>>, %arg7: memref<1x384xf32, #tpu.memory_space<vmem>>, %arg8: memref<1x130xf32, #tpu.memory_space<vmem>>, %arg9: memref<1x8x128xf32, #tpu.memory_space<vmem>>) attributes {dimension_semantics = [#tpu.dimension_semantics<parallel>], iteration_bounds = array<i64: 2>, scalar_prefetch = 0 : i64, scratch_operands = 0 : i64, tpu.core_type = #tpu.core_type<tc>, window_params = [{transform_indices = @transform_0, window_bounds = array<i64: 1, 4, 384>}, {pipeline_mode = #tpu.pipeline_mode<synchronous>, transform_indices = @transform_1, window_bounds = array<i64: 3, 8, 4>}, {pipeline_mode = #tpu.pipeline_mode<synchronous>, transform_indices = @transform_2, window_bounds = array<i64: 3, 8, 8>}, {pipeline_mode = #tpu.pipeline_mode<synchronous>, transform_indices = @transform_3, window_bounds = array<i64: 3, 8, 4>}, {pipeline_mode = #tpu.pipeline_mode<synchronous>, transform_indices = @transform_4, window_bounds = array<i64: 2, 4, 1>}, {pipeline_mode = #tpu.pipeline_mode<synchronous>, transform_indices = @transform_5, window_bounds = array<i64: 3, 8, 1>}, {pipeline_mode = #tpu.pipeline_mode<synchronous>, transform_indices = @transform_6, window_bounds = array<i64: 1, 384>}, {pipeline_mode = #tpu.pipeline_mode<synchronous>, transform_indices = @transform_7, window_bounds = array<i64: 1, 130>}, {transform_indices = @transform_8, window_bounds = array<i64: 1, 8, 128>}]} {
    %c0 = arith.constant 0 : index
    %c0_0 = arith.constant 0 : index
    %c0_1 = arith.constant 0 : index
    %0 = vector.load %arg1[%c0, %c0_0, %c0_1] : memref<1x4x384xf32, #tpu.memory_space<vmem>>, vector<1x4x384xf32>
    %1 = vector.shape_cast %0 : vector<1x4x384xf32> to vector<4x384xf32>
    %c0_2 = arith.constant 0 : index
    %c0_3 = arith.constant 0 : index
    %c0_4 = arith.constant 0 : index
    %2 = vector.load %arg5[%c0_2, %c0_3, %c0_4] : memref<2x4x1xf32, #tpu.memory_space<vmem>>, vector<1x4x1xf32>
    %3 = vector.shape_cast %2 : vector<1x4x1xf32> to vector<4x1xf32>
    %4 = vector.broadcast %3 : vector<4x1xf32> to vector<4x384xf32>
    %5 = arith.mulf %1, %4 : vector<4x384xf32>
    %c1 = arith.constant 1 : index
    %c0_5 = arith.constant 0 : index
    %c0_6 = arith.constant 0 : index
    %6 = vector.load %arg5[%c1, %c0_5, %c0_6] : memref<2x4x1xf32, #tpu.memory_space<vmem>>, vector<1x4x1xf32>
    %7 = vector.shape_cast %6 : vector<1x4x1xf32> to vector<4x1xf32>
    %8 = vector.broadcast %7 : vector<4x1xf32> to vector<4x384xf32>
    %9 = arith.addf %5, %8 : vector<4x384xf32>
    %cst = arith.constant 0.000000e+00 : f32
    %10 = vector.broadcast %cst : f32 to vector<4x384xf32>
    %11 = arith.maximumf %9, %10 : vector<4x384xf32>
    %c0_7 = arith.constant 0 : index
    %c0_8 = arith.constant 0 : index
    %12 = vector.load %arg7[%c0_7, %c0_8] : memref<1x384xf32, #tpu.memory_space<vmem>>, vector<1x384xf32>
    %13 = vector.broadcast %12 : vector<1x384xf32> to vector<4x384xf32>
    %14 = arith.mulf %11, %13 : vector<4x384xf32>
    %c0_9 = arith.constant 0 : index
    %c0_10 = arith.constant 0 : index
    %c0_11 = arith.constant 0 : index
    %15 = vector.load %arg4[%c0_9, %c0_10, %c0_11] : memref<3x8x4xf32, #tpu.memory_space<vmem>>, vector<1x8x4xf32>
    %16 = vector.shape_cast %15 : vector<1x8x4xf32> to vector<8x4xf32>
    %17 = vector.extract_strided_slice %1 {offsets = [0, 1], sizes = [4, 128], strides = [1, 1]} : vector<4x384xf32> to vector<4x128xf32>
    %cst_12 = arith.constant dense<0.000000e+00> : vector<8x128xf32>
    %18 = tpu.matmul %16, %17, %cst_12 {dimension_numbers = #tpu.dot_dimension_numbers<[1], [0], [0], [1], [0, 0, 1, 1], [], []>} : vector<8x4xf32>, vector<4x128xf32>, vector<8x128xf32> -> vector<8x128xf32>
    %c1_13 = arith.constant 1 : index
    %c0_14 = arith.constant 0 : index
    %c0_15 = arith.constant 0 : index
    %19 = vector.load %arg4[%c1_13, %c0_14, %c0_15] : memref<3x8x4xf32, #tpu.memory_space<vmem>>, vector<1x8x4xf32>
    %20 = vector.shape_cast %19 : vector<1x8x4xf32> to vector<8x4xf32>
    %21 = vector.extract_strided_slice %1 {offsets = [0, 129], sizes = [4, 128], strides = [1, 1]} : vector<4x384xf32> to vector<4x128xf32>
    %cst_16 = arith.constant dense<0.000000e+00> : vector<8x128xf32>
    %22 = tpu.matmul %20, %21, %cst_16 {dimension_numbers = #tpu.dot_dimension_numbers<[1], [0], [0], [1], [0, 0, 1, 1], [], []>} : vector<8x4xf32>, vector<4x128xf32>, vector<8x128xf32> -> vector<8x128xf32>
    %23 = arith.addf %18, %22 : vector<8x128xf32>
    %c2 = arith.constant 2 : index
    %c0_17 = arith.constant 0 : index
    %c0_18 = arith.constant 0 : index
    %24 = vector.load %arg4[%c2, %c0_17, %c0_18] : memref<3x8x4xf32, #tpu.memory_space<vmem>>, vector<1x8x4xf32>
    %25 = vector.shape_cast %24 : vector<1x8x4xf32> to vector<8x4xf32>
    %26 = vector.extract_strided_slice %1 {offsets = [0, 2], sizes = [4, 128], strides = [1, 1]} : vector<4x384xf32> to vector<4x128xf32>
    %cst_19 = arith.constant dense<0.000000e+00> : vector<8x128xf32>
    %27 = tpu.matmul %25, %26, %cst_19 {dimension_numbers = #tpu.dot_dimension_numbers<[1], [0], [0], [1], [0, 0, 1, 1], [], []>} : vector<8x4xf32>, vector<4x128xf32>, vector<8x128xf32> -> vector<8x128xf32>
    %28 = arith.addf %23, %27 : vector<8x128xf32>
    %c2_20 = arith.constant 2 : index
    %c0_21 = arith.constant 0 : index
    %c0_22 = arith.constant 0 : index
    %29 = vector.load %arg6[%c2_20, %c0_21, %c0_22] : memref<3x8x1xf32, #tpu.memory_space<vmem>>, vector<1x8x1xf32>
    %30 = vector.shape_cast %29 : vector<1x8x1xf32> to vector<8x1xf32>
    %31 = vector.broadcast %30 : vector<8x1xf32> to vector<8x128xf32>
    %32 = arith.addf %28, %31 : vector<8x128xf32>
    %c0_23 = arith.constant 0 : index
    %c0_24 = arith.constant 0 : index
    %c0_25 = arith.constant 0 : index
    %33 = vector.load %arg2[%c0_23, %c0_24, %c0_25] : memref<3x8x4xf32, #tpu.memory_space<vmem>>, vector<1x8x4xf32>
    %34 = vector.shape_cast %33 : vector<1x8x4xf32> to vector<8x4xf32>
    %35 = vector.extract_strided_slice %14 {offsets = [0, 0], sizes = [4, 130], strides = [1, 1]} : vector<4x384xf32> to vector<4x130xf32>
    %cst_26 = arith.constant dense<0.000000e+00> : vector<8x130xf32>
    %36 = tpu.matmul %34, %35, %cst_26 {dimension_numbers = #tpu.dot_dimension_numbers<[1], [0], [0], [1], [0, 0, 1, 1], [], []>} : vector<8x4xf32>, vector<4x130xf32>, vector<8x130xf32> -> vector<8x130xf32>
    %c1_27 = arith.constant 1 : index
    %c0_28 = arith.constant 0 : index
    %c0_29 = arith.constant 0 : index
    %37 = vector.load %arg2[%c1_27, %c0_28, %c0_29] : memref<3x8x4xf32, #tpu.memory_space<vmem>>, vector<1x8x4xf32>
    %38 = vector.shape_cast %37 : vector<1x8x4xf32> to vector<8x4xf32>
    %39 = vector.extract_strided_slice %14 {offsets = [0, 128], sizes = [4, 130], strides = [1, 1]} : vector<4x384xf32> to vector<4x130xf32>
    %cst_30 = arith.constant dense<0.000000e+00> : vector<8x130xf32>
    %40 = tpu.matmul %38, %39, %cst_30 {dimension_numbers = #tpu.dot_dimension_numbers<[1], [0], [0], [1], [0, 0, 1, 1], [], []>} : vector<8x4xf32>, vector<4x130xf32>, vector<8x130xf32> -> vector<8x130xf32>
    %41 = arith.addf %36, %40 : vector<8x130xf32>
    %c2_31 = arith.constant 2 : index
    %c0_32 = arith.constant 0 : index
    %c0_33 = arith.constant 0 : index
    %42 = vector.load %arg2[%c2_31, %c0_32, %c0_33] : memref<3x8x4xf32, #tpu.memory_space<vmem>>, vector<1x8x4xf32>
    %43 = vector.shape_cast %42 : vector<1x8x4xf32> to vector<8x4xf32>
    %44 = vector.extract_strided_slice %14 {offsets = [0, 1], sizes = [4, 130], strides = [1, 1]} : vector<4x384xf32> to vector<4x130xf32>
    %cst_34 = arith.constant dense<0.000000e+00> : vector<8x130xf32>
    %45 = tpu.matmul %43, %44, %cst_34 {dimension_numbers = #tpu.dot_dimension_numbers<[1], [0], [0], [1], [0, 0, 1, 1], [], []>} : vector<8x4xf32>, vector<4x130xf32>, vector<8x130xf32> -> vector<8x130xf32>
    %46 = arith.addf %41, %45 : vector<8x130xf32>
    %c0_35 = arith.constant 0 : index
    %c0_36 = arith.constant 0 : index
    %c0_37 = arith.constant 0 : index
    %47 = vector.load %arg6[%c0_35, %c0_36, %c0_37] : memref<3x8x1xf32, #tpu.memory_space<vmem>>, vector<1x8x1xf32>
    %48 = vector.shape_cast %47 : vector<1x8x1xf32> to vector<8x1xf32>
    %49 = vector.broadcast %48 : vector<8x1xf32> to vector<8x130xf32>
    %50 = arith.addf %46, %49 : vector<8x130xf32>
    %cst_38 = arith.constant 0.000000e+00 : f32
    %51 = vector.broadcast %cst_38 : f32 to vector<8x130xf32>
    %52 = arith.maximumf %50, %51 : vector<8x130xf32>
    %c0_39 = arith.constant 0 : index
    %c0_40 = arith.constant 0 : index
    %53 = vector.load %arg8[%c0_39, %c0_40] : memref<1x130xf32, #tpu.memory_space<vmem>>, vector<1x130xf32>
    %54 = vector.broadcast %53 : vector<1x130xf32> to vector<8x130xf32>
    %55 = arith.mulf %52, %54 : vector<8x130xf32>
    %c0_41 = arith.constant 0 : index
    %c0_42 = arith.constant 0 : index
    %c0_43 = arith.constant 0 : index
    %56 = vector.load %arg3[%c0_41, %c0_42, %c0_43] : memref<3x8x8xf32, #tpu.memory_space<vmem>>, vector<1x8x8xf32>
    %57 = vector.shape_cast %56 : vector<1x8x8xf32> to vector<8x8xf32>
    %58 = vector.extract_strided_slice %55 {offsets = [0, 0], sizes = [8, 128], strides = [1, 1]} : vector<8x130xf32> to vector<8x128xf32>
    %cst_44 = arith.constant dense<0.000000e+00> : vector<8x128xf32>
    %59 = tpu.matmul %57, %58, %cst_44 {dimension_numbers = #tpu.dot_dimension_numbers<[1], [0], [0], [1], [0, 0, 1, 1], [], []>} : vector<8x8xf32>, vector<8x128xf32>, vector<8x128xf32> -> vector<8x128xf32>
    %c1_45 = arith.constant 1 : index
    %c0_46 = arith.constant 0 : index
    %c0_47 = arith.constant 0 : index
    %60 = vector.load %arg3[%c1_45, %c0_46, %c0_47] : memref<3x8x8xf32, #tpu.memory_space<vmem>>, vector<1x8x8xf32>
    %61 = vector.shape_cast %60 : vector<1x8x8xf32> to vector<8x8xf32>
    %62 = vector.extract_strided_slice %55 {offsets = [0, 1], sizes = [8, 128], strides = [1, 1]} : vector<8x130xf32> to vector<8x128xf32>
    %cst_48 = arith.constant dense<0.000000e+00> : vector<8x128xf32>
    %63 = tpu.matmul %61, %62, %cst_48 {dimension_numbers = #tpu.dot_dimension_numbers<[1], [0], [0], [1], [0, 0, 1, 1], [], []>} : vector<8x8xf32>, vector<8x128xf32>, vector<8x128xf32> -> vector<8x128xf32>
    %64 = arith.addf %59, %63 : vector<8x128xf32>
    %c2_49 = arith.constant 2 : index
    %c0_50 = arith.constant 0 : index
    %c0_51 = arith.constant 0 : index
    %65 = vector.load %arg3[%c2_49, %c0_50, %c0_51] : memref<3x8x8xf32, #tpu.memory_space<vmem>>, vector<1x8x8xf32>
    %66 = vector.shape_cast %65 : vector<1x8x8xf32> to vector<8x8xf32>
    %67 = vector.extract_strided_slice %55 {offsets = [0, 2], sizes = [8, 128], strides = [1, 1]} : vector<8x130xf32> to vector<8x128xf32>
    %cst_52 = arith.constant dense<0.000000e+00> : vector<8x128xf32>
    %68 = tpu.matmul %66, %67, %cst_52 {dimension_numbers = #tpu.dot_dimension_numbers<[1], [0], [0], [1], [0, 0, 1, 1], [], []>} : vector<8x8xf32>, vector<8x128xf32>, vector<8x128xf32> -> vector<8x128xf32>
    %69 = arith.addf %64, %68 : vector<8x128xf32>
    %c1_53 = arith.constant 1 : index
    %c0_54 = arith.constant 0 : index
    %c0_55 = arith.constant 0 : index
    %70 = vector.load %arg6[%c1_53, %c0_54, %c0_55] : memref<3x8x1xf32, #tpu.memory_space<vmem>>, vector<1x8x1xf32>
    %71 = vector.shape_cast %70 : vector<1x8x1xf32> to vector<8x1xf32>
    %72 = vector.broadcast %71 : vector<8x1xf32> to vector<8x128xf32>
    %73 = arith.addf %69, %72 : vector<8x128xf32>
    %74 = arith.addf %73, %32 : vector<8x128xf32>
    %c0_56 = arith.constant 0 : index
    %c0_57 = arith.constant 0 : index
    %c0_58 = arith.constant 0 : index
    %75 = vector.load %arg9[%c0_56, %c0_57, %c0_58] : memref<1x8x128xf32, #tpu.memory_space<vmem>>, vector<1x8x128xf32>
    %76 = vector.shape_cast %75 : vector<1x8x128xf32> to vector<8x128xf32>
    %77 = vector.shape_cast %74 : vector<8x128xf32> to vector<1x8x128xf32>
    tpu.vector_store %arg9[%c0_56, %c0_57, %c0_58], %77 {strides = array<i32>} : memref<1x8x128xf32, #tpu.memory_space<vmem>>, vector<1x8x128xf32>,
    return
  }
  func.func @transform_0(%arg0: i32) -> (i32, i32, i32) {
    %c0_i32 = arith.constant 0 : i32
    %c0_i32_0 = arith.constant 0 : i32
    %c0_i32_1 = arith.constant 0 : i32
    return %arg0, %c0_i32, %c0_i32_0 : i32, i32, i32
  }
  func.func @transform_1(%arg0: i32) -> (i32, i32, i32) {
    %c0_i32 = arith.constant 0 : i32
    %c0_i32_0 = arith.constant 0 : i32
    %c0_i32_1 = arith.constant 0 : i32
    %c0_i32_2 = arith.constant 0 : i32
    return %c0_i32, %c0_i32_0, %c0_i32_1 : i32, i32, i32
  }
  func.func @transform_2(%arg0: i32) -> (i32, i32, i32) {
    %c0_i32 = arith.constant 0 : i32
    %c0_i32_0 = arith.constant 0 : i32
    %c0_i32_1 = arith.constant 0 : i32
    %c0_i32_2 = arith.constant 0 : i32
    return %c0_i32, %c0_i32_0, %c0_i32_1 : i32, i32, i32
  }
  func.func @transform_3(%arg0: i32) -> (i32, i32, i32) {
    %c0_i32 = arith.constant 0 : i32
    %c0_i32_0 = arith.constant 0 : i32
    %c0_i32_1 = arith.constant 0 : i32
    %c0_i32_2 = arith.constant 0 : i32
    return %c0_i32, %c0_i32_0, %c0_i32_1 : i32, i32, i32
  }
  func.func @transform_4(%arg0: i32) -> (i32, i32, i32) {
    %c0_i32 = arith.constant 0 : i32
    %c0_i32_0 = arith.constant 0 : i32
    %c0_i32_1 = arith.constant 0 : i32
    %c0_i32_2 = arith.constant 0 : i32
    return %c0_i32, %c0_i32_0, %c0_i32_1 : i32, i32, i32
  }
  func.func @transform_5(%arg0: i32) -> (i32, i32, i32) {
    %c0_i32 = arith.constant 0 : i32
    %c0_i32_0 = arith.constant 0 : i32
    %c0_i32_1 = arith.constant 0 : i32
    %c0_i32_2 = arith.constant 0 : i32
    return %c0_i32, %c0_i32_0, %c0_i32_1 : i32, i32, i32
  }
  func.func @transform_6(%arg0: i32) -> (i32, i32) {
    %c0_i32 = arith.constant 0 : i32
    %c0_i32_0 = arith.constant 0 : i32
    %c0_i32_1 = arith.constant 0 : i32
    return %c0_i32, %c0_i32_0 : i32, i32
  }
  func.func @transform_7(%arg0: i32) -> (i32, i32) {
    %c0_i32 = arith.constant 0 : i32
    %c0_i32_0 = arith.constant 0 : i32
    %c0_i32_1 = arith.constant 0 : i32
    return %c0_i32, %c0_i32_0 : i32, i32
  }
  func.func @transform_8(%arg0: i32) -> (i32, i32, i32) {
    %c0_i32 = arith.constant 0 : i32
    %c0_i32_0 = arith.constant 0 : i32
    %c0_i32_1 = arith.constant 0 : i32
    return %arg0, %c0_i32, %c0_i32_0 : i32, i32, i32
  }
}

</mosaic_0001>

<bundles_post_ra>
// kernel: tpu_custom_call.1
= control target key start
LH: loop header
LB: loop body
LE: loop exit
PB: predicated region body
PF: predicated region fallthrough
CT: control target
= control target key end

     0   :  { %13 = vsyncpa [#allocation3], 0  ;;  %s1699_s0 = inlined_call_operand.vmem [shape: f32[2,4,384], index: 0, kind: input, shape index: {}]   ;;  %s1700_s1 = inlined_call_operand.vmem [shape: f32[3,8,4], index: 1, kind: input, shape index: {}]   ;;  %s1701_s2 = inlined_call_operand.vmem [shape: f32[3,8,8], index: 2, kind: input, shape index: {}]   ;;  %s1702_s3 = inlined_call_operand.vmem [shape: f32[3,8,4], index: 3, kind: input, shape index: {}]   ;;  %s1703_s4 = inlined_call_operand.vmem [shape: f32[2,4,1], index: 4, kind: input, shape index: {}]   ;;  %s1704_s5 = inlined_call_operand.vmem [shape: f32[3,8,1], index: 5, kind: input, shape index: {}]   ;;  %s1705_s6 = inlined_call_operand.vmem [shape: f32[1,384], index: 6, kind: input, shape index: {}]   ;;  %s1706_s7 = inlined_call_operand.vmem [shape: f32[1,130], index: 7, kind: input, shape index: {}]   ;;  %s1707_s8 = inlined_call_operand.hbm [shape: f32[2,8,128], index: 8, kind: output, shape index: {}]  }
   0x1   :  { %15 = vsyncpa [#allocation3 + $0x1], 0  ;;  %s1470_s27 = smov 0   ;;  %s1472_s28 = smov 0  }
   0x2   :  { %s1474_s29 = smov 0   ;;  %s1476_s30 = smov 0  }
   0x3 LB: > { %s1491_s9 = sadd.s32 4294967295, %s1416_s30   ;;  %s1211_s10 = sadd.s32 4294967294, %s1416_s30   ;;  %s1416_s30 = sphi %s1476_s30, %s1713_s30   ;;  %s1412_s29 = sphi %s1474_s29, %s1712_s29   ;;  %s1408_s28 = sphi %s1472_s28, %s1711_s28   ;;  %s1404_s27 = sphi %s1470_s27, %s1710_s27  }
   0x4   : > { %s1495_s11 = sadd.s32 1, %s1416_s30   ;;  %s201_s12 = sadd.s32 1, %s1412_s29 }
   0x5   : > { %s198_s13 = ssub.s32 %s1416_s30, %s1495_s11  ;;  %p211_p0 = scmp.ne.s32.totalorder %s1412_s29, %s1408_s28 }
   0x6   : > { %p199_p1 = scmp.eq.s32.totalorder %s198_s13, 0  ;;  %p212_p2 = scmp.eq.s32.totalorder %s1491_s9, 1 }
   0x7   : > { %p217_p3 = scmp.ne.s32.totalorder %s1408_s28, %s1404_s27  ;;  %p218_p4 = scmp.eq.s32.totalorder %s1211_s10, 1 }
   0x8   : > { %s1506_s14 = scalar_select %p199_p1, %s1412_s29, %s201_s12  }
   0x9   : > { %p1508_p5 = por %p212_p2, %p211_p0  ;;  %p1512_p6 = por %p218_p4, %p217_p3 }
   0xa   : > { %p1214_p7 = scmp.ge.s32.totalorder %s1416_s30, 1  ;;  %p265_p8 = scmp.lt.s32.totalorder %s1416_s30, 3 }
   0xc   : > { %p266_p9 = pnand %p1214_p7, %p265_p8 }
   0xd   : > { %v306_v0 = vld [vmem:[%s1703_s4] sm:$0xf] (!%p266_p9)  ;;  %p299_p10 = scmp.lt.s32.totalorder (!%p266_p9), %s1491_s9, 1  ;;  %v1418_v1 = vmov (!%p266_p9), 0   ;;  %v1217_v2 = vld [vmem:[%s1703_s4 + $0x4] sm:$0xf] (!%p266_p9)  ;;  %v314_v9 = vlaneseq (!%p266_p9) }
   0xe   : > { %269 = sbr.rel (%p266_p9) target bundleno = 856 (0x358), region = 52  ;;  %1351 = vset.pattern.permute.xlu0 (!%p266_p9), %v1418_v1  ;;  %1352 = vset.pattern.permute.xlu1 (!%p266_p9), %v1418_v1  ;;  %s1419_s26 = smov (!%p266_p9), 127   ;;  %v1420_v6 = vmov (!%p266_p9), 0.0   ;;  %vm1421_vm0 = vmmov (!%p266_p9), 0   ;;  %v1422_v7 = vmov (!%p266_p9), 839922192  }
   0xf   : > { %309 = vperm.xlu0 (!%p266_p9), %1351, %v306_v0   ;;  %1260 = vmatprep.subr.mxu1 (!%p266_p9), %v1420_v6  ;;  %v312_v8 = vunpack.c.l.s4 (!%p266_p9), %v1422_v7  ;;  %v1544_v11 = vshrl.u32 (!%p266_p9), %v314_v9, 7  ;;  %vm368_vm1 = vcmask (!%p266_p9), 1039360   ;;  %vm374_vm2 = vcmask (!%p266_p9), 1043456   ;;  %v1218_v15 = vld [vmem:[%s1702_s3 + $0x8] sm:$0xff] (!%p266_p9)  ;;  %v339_v19 = vld [vmem:[%s1705_s6] sm:$0x7] (!%p266_p9) }
  0x10   : > { %1265 = vmatprep.subr.mxu0 (!%p266_p9), %v1420_v6  ;;  %1262 = vmatprep.mubr.msk.f32.mxu1 (!%p266_p9), %vm1421_vm0, %v1420_v6  ;;  %vm370_vm3 = vcmask (!%p266_p9), 31744   ;;  %v1227_v38 = vld [vmem:[%s1700_s1 + $0x8] sm:$0xff] (!%p266_p9)  ;;  %v864_v39 = vld [vmem:[%s1704_s5] sm:$0xff] (!%p266_p9)  ;;  %s1423_s24 = smov (!%p266_p9), 126   ;;  %v1234_v43 = vld [vmem:[%s1700_s1 + $0x10] sm:$0xff] (!%p266_p9)  ;;  %vm531_vm4 = vcmask (!%p266_p9), 1031168  }
  0x11   : > { %1267 = vmatprep.mubr.msk.f32.mxu0 (!%p266_p9), %vm1421_vm0, %v1420_v6  ;;  %v313_v10 = vunpack.c.0.s8 (!%p266_p9), %v312_v8  ;;  %v343_v16 = vsub.s32 (!%p266_p9), 0, %v1544_v11  ;;  %v347_v17 = vsub.s32 (!%p266_p9), 1, %v1544_v11  ;;  %v351_v22 = vsub.s32 (!%p266_p9), 2, %v1544_v11  ;;  %v617_v40 = vld [vmem:[%s1700_s1] sm:$0xff] (!%p266_p9)  ;;  %v1223_v54 = vld [vmem:[%s1702_s3 + $0x10] sm:$0xff] (!%p266_p9)  ;;  %v1238_v7 = vld [vmem:[%s1701_s2 + $0x8] sm:$0xff] (!%p266_p9) }
  0x12   : > { %v358_v50 = vld [vmem:[%s1702_s3] sm:$0xff] (!%p266_p9)  ;;  %vm899_vm5 = vcmask (!%p266_p9), 64512   ;;  %s296_s18 = sand.u32 (!%p266_p9), 1, %s1408_s28   ;;  %s1245_s20 = sshll.u32 (!%p266_p9), %s1491_s9, 7 }
  0x13   : > { %325 = vperm.xlu0 (!%p266_p9), %1351, %v1217_v2   ;;  %v316_v13 = vsub.s32 (!%p266_p9), %v313_v10, %v1544_v11  ;;  %v344_v23 = vrot.slane (!%p266_p9), %v339_v19, %v343_v16  ;;  %v348_v24 = vrot.slane (!%p266_p9), %v339_v19, %v347_v17  ;;  %v352_v29 = vrot.slane (!%p266_p9), %v339_v19, %v351_v22  ;;  %v874_v55 = vld [vmem:[%s1706_s7] sm:$0x3] (!%p266_p9)  ;;  %v1226_v2 = vld [vmem:[%s1704_s5 + $0x10] sm:$0xff] (!%p266_p9)  ;;  %s1657_s10 = scalar_lea.hbm (!%p266_p9), %s1707_s8, %s1245_s20  ;;  %s1139_s12 = scalar_lea.sflag (!%p266_p9), [#allocation3], %s296_s18 }
  0x14   : > { %v879_v58 = vrot.slane (!%p266_p9), %v874_v55, %v343_v16  ;;  %v883_v61 = vrot.slane (!%p266_p9), %v874_v55, %v347_v17  ;;  %v888_v11 = vld [vmem:[%s1701_s2] sm:$0xff] (!%p266_p9) }
  0x15   : > { %s300_s19 = scalar_select %p299_p10, %s1491_s9, 1  ;;  %v354_v32 = vcombine.low %v344_v23, %v348_v24 }
  0x16   : > { %s1424_s9 = smov [#allocation2]  }
  0x17   : > { %s1305_s22 = smul.u32 12, %s300_s19  ;;  %s1215_s19 = sshll.u32 %s296_s18, 3 }
  0x18   : > { %s298_s21 = scalar_lea.vmem [#allocation2], %s1215_s19 }
  0x19   : > { %s303_s25 = scalar_lea.vmem %s1699_s0, %s1305_s22  ;;  %s1152_s22 = sshll.u32 %s298_s21, 4  ;;  %s1659_s22 = int_to_ptr.vmem [resolvable:$true] %s1152_s22 }
  0x1a   : > { %v1529_v3 = vld [vmem:[%s303_s25] sm:$0xff]  ;;  %v305_v5 = vld [vmem:[%s303_s25 + $0x8] sm:$0xf] }
  0x1b   : > { %v1533_v4 = vcombine.high %v1529_v3, %v1529_v3 }
  0x1d   : > { %364 = vrot.lane.b32.xlu1 %v1533_v4, %s1419_s26 }
  0x21   : > { %366 = vrot.lane.b32.xlu1 %v305_v5, %s1419_s26 }
  0x8e   : > { %v310_v18 = vpop.permute.xlu0 %309 }
  0x8f   : > { %v365_v12 = vpop.permute.xlu1 %364  ;;  %v317_v21 = vrot.slane %v310_v18, %v316_v13 }
  0x91   : > { %v319_v26 = vmul.f32 %v317_v21, %v1529_v3  ;;  %v320_v27 = vmul.f32 %v317_v21, %v305_v5 }
  0x92   : > { %v326_v25 = vpop.permute.xlu0 %325 }
  0x93   : > { %v367_v14 = vpop.permute.xlu1 %366  ;;  %v333_v28 = vrot.slane %v326_v25, %v316_v13  ;;  %v1241_v13 = vld [vmem:[%s1701_s2 + $0x10] sm:$0xff] }
  0x94   : > { %v369_v20 = vsel %vm368_vm1, %v365_v12, %v367_v14 }
  0x95   : > { %1261 = vmatpush3.msk.msra.mxu1 %vm374_vm2, %v369_v20  ;;  %v335_v30 = vadd.f32 %v333_v28, %v319_v26  ;;  %v336_v31 = vadd.f32 %v333_v28, %v320_v27 }
  0x96   : > { %1263 = vmatmul.mubr.msk.f32.vlgmr.msra.gmra.mrb[0].mxu1 %vm370_vm3, %v1218_v15 }
  0x97   : > { %694 = vmatprep.mubr.f32.mxu1 %v1420_v6  ;;  %v337_v33 = vmax.f32 %v335_v30, 0.0  ;;  %v338_v34 = vmax.f32 %v336_v31, 0.0 }
  0x99   : > { %v357_v35 = vmul.f32 %v352_v29, %v338_v34  ;;  %v356_v36 = vmul.f32 %v354_v32, %v337_v33 }
  0x9b   : > { %1228 = vmatprep.subr.msk.mxu1 %vm374_vm2, %v357_v35  ;;  %779 = vrot.lane.b32.xlu0 %v356_v36, %s1419_s26  ;;  %v622_v37 = vcombine.high %v356_v36, %v356_v36 }
  0x9d   : > { %781 = vrot.lane.b32.xlu1 %v622_v37, %s1419_s26  ;;  %1229 = vmatpush1.msk.msra.mxu1 %vm374_vm2, %v622_v37 }
  0x9e   : > { %1231 = vmatprep.subr.msk.mxu1 %vm374_vm2, %v622_v37  ;;  %1230 = vmatmul.mubr.msk.f32.vlgmr.msra.gmra.mrb[2].mxu1 %vm370_vm3, %v1227_v38 }
  0x9f   : > { %867 = vperm.xlu0 %1351, %v864_v39   ;;  %1232 = vmatpush1.msk.msra.mxu1 %vm374_vm2, %v356_v36 }
  0xa0   : > { %770 = vmatprep.mubr.f32.mxu1 %v1420_v6 }
  0xa1   : > { %447 = vrot.lane.b32.xlu1 %v1529_v3, %s1419_s26 }
  0xa3   : > { %527 = vrot.lane.b32.xlu0 %v1529_v3, %s1423_s24  ;;  %v1243_v3 = vld [vmem:[%s1704_s5 + $0x8] sm:$0xff] }
  0xa5   : > { %529 = vrot.lane.b32.xlu1 %v1533_v4, %s1423_s24 }
  0xa6   : > { %1233 = vmatmul.mubr.msk.f32.vlgmr.msra.gmra.mrb[2].mxu1 %vm370_vm3, %v617_v40 }
  0xa7   : > { %855 = vmatprep.mubr.f32.mxu1 %v1420_v6 }
 0x10d   : > { %v780_v41 = vpop.permute.xlu0 %779 }
 0x10f   : > { %v782_v42 = vpop.permute.xlu1 %781 }
 0x110   : > { %v783_v44 = vsel %vm368_vm1, %v780_v41, %v782_v42  ;;  %1235 = vmatprep.subr.msk.mxu1 %vm374_vm2, %v782_v42 }
 0x111   : > { %1236 = vmatpush1.msk.msra.mxu1 %vm374_vm2, %v783_v44 }
 0x112   : > { %1237 = vmatmul.mubr.msk.f32.vlgmr.msra.gmra.mrb[2].mxu1 %vm370_vm3, %v1234_v43 }
 0x113   : > { %v448_v45 = vpop.permute.xlu1 %447 }
 0x114   : > { %v449_v46 = vsel %vm368_vm1, %v448_v45, %v365_v12 }
 0x115   : > { %1266 = vmatpush3.msk.msra.mxu0 %vm374_vm2, %v449_v46 }
 0x116   : > { %1270 = vmatprep.subr.mxu0 %v1420_v6  ;;  %1268 = vmatmul.mubr.msk.f32.vlgmr.msra.gmra.mrb[0].mxu0 %vm370_vm3, %v358_v50 }
 0x117   : > { %v530_v52 = vpop.permute.xlu1 %529  ;;  %1272 = vmatprep.mubr.msk.f32.mxu0 %vm1421_vm0, %v1420_v6 }
 0x11e   : > { %v868_v49 = vpop.permute.xlu0 %867 }
 0x122   : > { %v528_v51 = vpop.permute.xlu0 %527 }
 0x123   : > { %v532_v53 = vsel %vm531_vm4, %v528_v51, %v530_v52 }
 0x124   : > { %1271 = vmatpush3.msk.msra.mxu0 %vm374_vm2, %v532_v53 }
 0x125   : > { %1275 = vmatprep.subr.mxu0 %v1420_v6  ;;  %1273 = vmatmul.mubr.msk.f32.vlgmr.msra.gmra.mrb[0].mxu0 %vm370_vm3, %v1223_v54 }
 0x126   : > { %1277 = vmatprep.mubr.msk.f32.mxu0 %vm1421_vm0, %v1420_v6 }
 0x169   : > { %v443_v47 = vpop.f32.mrb[0].mxu1 }
 0x16a   : > { %v1264_v48 = vpop.f32.mrb[1].mxu1 }
 0x1e5   : > { %v857_v56 = vpop.f32.mrb[2].mxu1 }
 0x1e6   : > { %v870_v57 = vadd.f32 %v868_v49, %v857_v56  ;;  %v859_v59 = vpop.f32.mrb[3].mxu1 }
 0x1e7   : > { %v871_v60 = vadd.f32 %v868_v49, %v859_v59 }
 0x1e8   : > { %v872_v62 = vmax.f32 %v870_v57, 0.0 }
 0x1e9   : > { %v873_v63 = vmax.f32 %v871_v60, 0.0 }
 0x1ea   : > { %v886_v0 = vmul.f32 %v879_v58, %v872_v62 }
 0x1eb   : > { %v887_v1 = vmul.f32 %v883_v61, %v873_v63 }
 0x1ec   : > { %893 = vrot.lane.b32.xlu0 %v886_v0, %s1419_s26 }
 0x1ed   : > { %895 = vrot.lane.b32.xlu1 %v887_v1, %s1419_s26  ;;  %s1354_s26 = scalar_lea.vmem %s1659_s22, 128 }
 0x1ee   : > { %p1355_p11 = scmp.ne.s32.totalorder %s1659_s22, %s1354_s26 }
 0x1f0   : > { %1048 = vrot.lane.b32.xlu0 %v886_v0, %s1423_s24  ;;  %p1356_p12 = pnand %p1355_p11, %p1508_p5 }
 0x1f1   : > { %1050 = vrot.lane.b32.xlu1 %v887_v1, %s1423_s24  ;;  %s1358_s24 = sshll.u32 %s1424_s9, 4  ;;  %s1359_s24 = int_to_ptr.vmem [resolvable:$false] %s1358_s24 }
 0x1f2   : > { %p1357_p13 = pneg %p1356_p12  ;;  %s1360_s13 = scalar_lea.vmem %s1359_s24, 256 }
 0x1f3   : > { %p1361_p0 = scmp.lt.s32.totalorder %s1659_s22, %s1359_s24  ;;  %p1362_p1 = scmp.lt.s32.totalorder %s1360_s13, %s1354_s26 }
 0x1f4   : > { %613 = vperm.xlu0 %1351, %v1226_v2  }
 0x1f5   : > { %1132 = vperm.xlu1 %1352, %v1243_v3   ;;  %p1363_p2 = por %p1362_p1, %p1361_p0 }
 0x1f7   : > { %p1364_p3 = pnand %p1363_p2, %p1357_p13 }
 0x25e   : > { %v894_v4 = vpop.permute.xlu0 %893 }
 0x25f   : > { %v896_v5 = vpop.permute.xlu1 %895 }
 0x260   : > { %v897_v8 = vsel %vm368_vm1, %v894_v4, %v896_v5 }
 0x261   : > { %1276 = vmatpush3.msra.mxu0 %v897_v8 }
 0x262   : > { %1278 = vmatmul.mubr.msk.f32.vlgmr.msra.gmra.mrb[0].mxu0 %vm899_vm5, %v1238_v7  ;;  %1280 = vmatprep.subr.mxu0 %v1420_v6  ;;  %v1049_v9 = vpop.permute.xlu0 %1048 }
 0x263   : > { %1281 = vmatpush3.msra.mxu0 %v886_v0  ;;  %1282 = vmatprep.mubr.msk.f32.mxu0 %vm1421_vm0, %v1420_v6  ;;  %v1051_v10 = vpop.permute.xlu1 %1050 }
 0x264   : > { %1285 = vmatprep.subr.mxu0 %v1420_v6  ;;  %v1052_v12 = vsel %vm531_vm4, %v1049_v9, %v1051_v10 }
 0x26a   : > { %1283 = vmatmul.mubr.msk.f32.vlgmr.msra.gmra.mrb[0].mxu0 %vm899_vm5, %v888_v11 }
 0x26b   : > { %1286 = vmatpush3.msra.mxu0 %v1052_v12  ;;  %1287 = vmatprep.mubr.msk.f32.mxu0 %vm1421_vm0, %v1420_v6 }
 0x272   : > { %1288 = vmatmul.mubr.msk.f32.vlgmr.msra.gmra.mrb[0].mxu0 %vm899_vm5, %v1241_v13 }
 0x273   : > { %v614_v14 = vpop.permute.xlu0 %613 }
 0x274   : > { %v1290_v15 = vadd.f32 %v614_v14, %v443_v47  ;;  %v1133_v17 = vpop.permute.xlu1 %1132 }
 0x345   : > { %v1123_v16 = vpop.f32.mrb[0].mxu0 }
 0x346   : > { %v1291_v18 = vadd.f32 %v1290_v15, %v1123_v16  ;;  %v1289_v19 = vpop.f32.mrb[1].mxu0 }
 0x348   : > { %v1292_v20 = vadd.f32 %v1291_v18, %v1133_v17 }
 0x34a   : > { %1137 = vst [vmem:[%s298_s21] sm:$0xff] %v1292_v20 }
 0x34b   : > { %1367 = shalt.err (!%p1364_p3)
}
 0x34c   : > { %s1368_s17 = scalar_lea.hbm %s1657_s10, 128  ;;  %s1372_s20 = scalar_lea.hbm %s1707_s8, 256 }
 0x34d   : > { %p1369_p4 = scmp.ne.s32.totalorder %s1657_s10, %s1368_s17  ;;  %p1373_p9 = scmp.lt.u32.totalorder %s1657_s10, %s1707_s8 }
 0x34e   : > { %p1374_p10 = scmp.lt.u32.totalorder %s1372_s20, %s1368_s17  ;;  %p1376_p12 = scmp.lt.u32.totalorder %s1368_s17, %s1657_s10 }
 0x34f   : > { %p1370_p7 = pnand %p1369_p4, %p1508_p5 }
 0x350   : > { %p1375_p11 = por %p1374_p10, %p1373_p9 }
 0x351   : > { %p1371_p8 = pneg %p1370_p7 }
 0x352   : > { %p1377_p13 = por %p1376_p12, %p1375_p11 }
 0x354   : > { %p1378_p0 = pnand %p1377_p13, %p1371_p8 }
 0x356   : > { %1381 = shalt.err (!%p1378_p0)
}
 0x357   : > { %1306 = dma.vmem_to_hbm [thread:$0]  (%p1508_p5), %s1659_s22, 128, %s1657_s10, %s1139_s12  }
 0x358 PF: > { %p1312_p1 = scmp.ge.s32.totalorder %s1416_s30, 2  ;;  %s1164_s25 = sand.u32 1, %s1404_s27  }
 0x359   : > { %s1165_s26 = scalar_lea.sflag [#allocation3], %s1164_s25 }
 0x35a   : > { %p1309_p2 = pnand %p1312_p1, %p1512_p6 }
 0x35c   : > { %1399 = dma.done.wait (!%p1309_p2), %s1165_s26, 128  }
 0x35d   : > { %1401 = vsyncadd (!%p1309_p2), %s1165_s26, 4294967168  ;;  %p18_p3 = scmp.ge.s32.totalorder %s1495_s11, 4   ;;  %s1710_s27 = smov %s1408_s28 }
 0x35e   : > { %s1711_s28 = smov %s1412_s29  ;;  %s1712_s29 = smov %s1506_s14 }
 0x35f   : > { %s1713_s30 = smov %s1495_s11  ;;  %20 = sbr.rel (!%p18_p3) target bundleno = 3 (0x3), region = 96 }
 0x366   :  { %1170 = vsyncpa [#allocation3], 1 }
 0x367   :  { %1172 = vsyncpa [#allocation3 + $0x1], 1 }

</bundles_post_ra>
